<compile_context>
chip_gen: v7x
topology: tpu7x:2x2x1
jax: 0.10.0
libtpu: 0.0.40
codegen_flags: <defaults>
</compile_context>

<pallas_src>
import math
import functools

import jax
import jax.numpy as jnp
import numpy as np
from jax import lax
from jax.experimental import pallas as pl
from jax.experimental.pallas import tpu as pltpu


# ----------------------------- Pallas kernel --------------------------------

def _mha_kernel(valid_ref,                            # scalar-prefetch: (B,) int32 in SMEM
                q_ref, k_ref, v_ref,                  # (Bt,Lq,Dq), (Bt,Lk,Dk), (Bt,Lk,Dv)  bf16
                wqt_ref, wkt_ref, wvt_ref, wot_ref,   # (Dq,Hd), (Dk,Hd), (Dv,Hd), (Hd,Hd)  bf16
                o_ref,                                # (Bt, Lq, Hd) out dtype
                *, num_heads):
    Bt, Lq, Dq = q_ref.shape
    _, Lk, Dk = k_ref.shape
    Dv = v_ref.shape[-1]
    Hd = wqt_ref.shape[-1]
    dh = Hd // num_heads
    mm_dtype = q_ref.dtype
    b0 = pl.program_id(0) * Bt                        # first batch row of this block

    # --- packed projections: all Bt*L rows in one MXU matmul each (M = Bt*L).
    # The 1/sqrt(dh) scale is already folded into wqt by the wrapper.
    Qf = jnp.dot(q_ref[...].reshape(Bt * Lq, Dq), wqt_ref[...],
                 preferred_element_type=jnp.float32)                      # (Bt*Lq, Hd)
    Kf = jnp.dot(k_ref[...].reshape(Bt * Lk, Dk), wkt_ref[...],
                 preferred_element_type=jnp.float32)                      # (Bt*Lk, Hd)
    Vf = jnp.dot(v_ref[...].reshape(Bt * Lk, Dv), wvt_ref[...],
                 preferred_element_type=jnp.float32)                      # (Bt*Lk, Hd)

    # --- key-position mask, shared across heads: keep (b,q,k) iff k < valid_len[b].
    # Built with Bt scalar compares (Bt is small and static).
    key_pos = lax.broadcasted_iota(jnp.int32, (Bt, Lq, Lk), 2)
    batch_id = lax.broadcasted_iota(jnp.int32, (Bt, Lq, Lk), 0)
    keep = None
    for i in range(Bt):
        keep_i = jnp.logical_and(batch_id == i, key_pos < valid_ref[b0 + i])
        keep = keep_i if keep is None else jnp.logical_or(keep, keep_i)

    Wo = wot_ref[...]                                                     # (Hd, Hd)
    out_acc = jnp.zeros((Bt * Lq, Hd), jnp.float32)

    # --- per-head attention via static lane slices of the (rows, Hd) layout:
    # no head-major swapaxes/relayout, no concat (output projection accumulated
    # per head).
    # TODO(synk): for production Lk, tile over keys with an online-softmax
    # (flash) accumulator instead of materializing (Lq, Lk) scores per head.
    for h in range(num_heads):
        sl = slice(h * dh, (h + 1) * dh)
        Qh = Qf[:, sl].reshape(Bt, Lq, dh).astype(mm_dtype)
        Kh = Kf[:, sl].reshape(Bt, Lk, dh).astype(mm_dtype)
        Vh = Vf[:, sl].reshape(Bt, Lk, dh).astype(mm_dtype)

        # scores: contract last dims directly (no explicit K transpose).
        s = jnp.einsum('bqd,bkd->bqk', Qh, Kh,
                       preferred_element_type=jnp.float32)                # (Bt, Lq, Lk)
        # Masked softmax in f32. Fully masked rows (valid_len == 0) give a
        # uniform distribution, matching the d2l reference behavior.
        s = jnp.where(keep, s, jnp.float32(-1000000.0))
        m = jnp.max(s, axis=-1, keepdims=True)
        e = jnp.exp(s - m)
        # approx reciprocal runs on the EUP slot; ~1e-3 rel error (fwd/eval OK).
        p = e * pl.reciprocal(jnp.sum(e, axis=-1, keepdims=True), approx=True)

        ctx = jnp.einsum('bqk,bkd->bqd', p.astype(mm_dtype), Vh,
                         preferred_element_type=jnp.float32)              # (Bt, Lq, dh)
        out_acc = out_acc + jnp.dot(ctx.reshape(Bt * Lq, dh).astype(mm_dtype),
                                    Wo[sl, :],
                                    preferred_element_type=jnp.float32)

    # Exact-width (unpadded) store; no wrapper-side slice pass needed.
    o_ref[...] = out_acc.reshape(Bt, Lq, Hd).astype(o_ref.dtype)


# ------------------------------ wrapper --------------------------------------

def _pick_block_b(batch, seq_len, target_rows=256, min_grid_steps=8):
    """Pick batch rows per grid step: pack rows toward `target_rows` MXU rows,
    but keep >= min_grid_steps grid steps when the batch is large enough."""
    want = max(1, min(batch, -(-target_rows // max(seq_len, 1))))
    if batch >= min_grid_steps:
        want = max(1, min(want, batch // min_grid_steps))
    for bt in range(want, 0, -1):
        if batch % bt == 0:
            return bt
    return 1


def multi_head_attention(queries, keys, values, valid_lens,
                         w_q, w_k, w_v, w_o, *, num_heads,
                         matmul_dtype=jnp.bfloat16, out_dtype=None,
                         block_b=None):
    """queries: (B, Lq, Dq); keys/values: (B, Lk, Dk/Dv); valid_lens: (B,) int32.
    Weights are torch Linear weights of shape (out_features, in_features), bias=False."""
    B, Lq, Dq = queries.shape
    _, Lk, Dk = keys.shape
    _, _, Dv = values.shape
    Hd = w_q.shape[0]                                   # num_hiddens
    assert Hd % num_heads == 0
    dh = Hd // num_heads
    out_dtype = queries.dtype if out_dtype is None else out_dtype

    if block_b is None:
        block_b = _pick_block_b(B, max(Lq, Lk))
    assert B % block_b == 0

    # Pre-transpose weights ((out,in) -> (in,out)) so no .T runs in-kernel.
    # Fold 1/sqrt(dh) into W_q in f32 before the bf16 cast.
    wq_t = (w_q.T * jnp.float32(1.0 / math.sqrt(dh))).astype(matmul_dtype)    # (Dq, Hd)
    wk_t = w_k.T.astype(matmul_dtype)                                         # (Dk, Hd)
    wv_t = w_v.T.astype(matmul_dtype)                                         # (Dv, Hd)
    wo_t = w_o.T.astype(matmul_dtype)                                         # (Hd, Hd)

    q = queries.astype(matmul_dtype)
    k = keys.astype(matmul_dtype)
    v = values.astype(matmul_dtype)
    vl = valid_lens.astype(jnp.int32)

    # TODO(synk): only the 1-D (B,) valid_lens path of masked_softmax is wired up;
    # valid_lens=None and 2-D (B, Lq) masks are not handled here.

    grid = (B // block_b,)
    grid_spec = pltpu.PrefetchScalarGridSpec(
        num_scalar_prefetch=1,
        grid=grid,                                      # block_b batch rows per step
        in_specs=[
            pl.BlockSpec((block_b, Lq, Dq), lambda i, vl: (i, 0, 0)),
            pl.BlockSpec((block_b, Lk, Dk), lambda i, vl: (i, 0, 0)),
            pl.BlockSpec((block_b, Lk, Dv), lambda i, vl: (i, 0, 0)),
            # weights: constant index_map -> resident across the grid (not re-DMA'd).
            pl.BlockSpec((Dq, Hd), lambda i, vl: (0, 0)),
            pl.BlockSpec((Dk, Hd), lambda i, vl: (0, 0)),
            pl.BlockSpec((Dv, Hd), lambda i, vl: (0, 0)),
            pl.BlockSpec((Hd, Hd), lambda i, vl: (0, 0)),
        ],
        out_specs=pl.BlockSpec((block_b, Lq, Hd), lambda i, vl: (i, 0, 0)),
    )

    kernel = functools.partial(_mha_kernel, num_heads=num_heads)
    return pl.pallas_call(
        kernel,
        out_shape=jax.ShapeDtypeStruct((B, Lq, Hd), out_dtype),
        grid_spec=grid_spec,
        compiler_params=pltpu.CompilerParams(
            dimension_semantics=("parallel",)),         # batch blocks shard across TCs
    )(vl, q, k, v, wq_t, wk_t, wv_t, wo_t)


# --------------------------- pure-JAX reference -------------------------------

def _reference(queries, keys, values, valid_lens, w_q, w_k, w_v, w_o, num_heads):
    def transpose_qkv(X, H):
        B, L, D = X.shape
        X = X.reshape(B, L, H, D // H).transpose(0, 2, 1, 3)
        return X.reshape(B * H, L, D // H)

    Q = transpose_qkv(queries @ w_q.T, num_heads)
    K = transpose_qkv(keys @ w_k.T, num_heads)
    V = transpose_qkv(values @ w_v.T, num_heads)
    vl = jnp.repeat(valid_lens, num_heads, axis=0)            # (B*H,)

    d = Q.shape[-1]
    scores = jnp.einsum('bqd,bkd->bqk', Q, K) / math.sqrt(d)
    mask = jnp.arange(scores.shape[-1])[None, None, :] < vl[:, None, None]
    scores = jnp.where(mask, scores, -1000000.0)
    p = jax.nn.softmax(scores, axis=-1)
    out = jnp.einsum('bqk,bkd->bqd', p, V)                    # (B*H, Lq, dh)

    BH, Lq, dh = out.shape
    B = BH // num_heads
    out = out.reshape(B, num_heads, Lq, dh).transpose(0, 2, 1, 3).reshape(B, Lq, -1)
    return out @ w_o.T


# ----------------------------------- main -------------------------------------

if __name__ == "__main__":
    B, Lq, Lk = 2, 8, 8
    query_size = key_size = value_size = 16
    num_hiddens = 32
    num_heads = 4

    root = jax.random.PRNGKey(0)
    kq, kk, kv, kwq, kwk, kwv, kwo = jax.random.split(root, 7)

    queries = jax.random.normal(kq, (B, Lq, query_size), dtype=jnp.float32)
    keys = jax.random.normal(kk, (B, Lk, key_size), dtype=jnp.float32)
    values = jax.random.normal(kv, (B, Lk, value_size), dtype=jnp.float32)
    valid_lens = jnp.array([3, 6], dtype=jnp.int32)

    # deterministic "Linear" weights, shape (out_features, in_features), bias=False
    w_q = 0.1 * jax.random.normal(kwq, (num_hiddens, query_size), dtype=jnp.float32)
    w_k = 0.1 * jax.random.normal(kwk, (num_hiddens, key_size), dtype=jnp.float32)
    w_v = 0.1 * jax.random.normal(kwv, (num_hiddens, value_size), dtype=jnp.float32)
    w_o = 0.1 * jax.random.normal(kwo, (num_hiddens, num_hiddens), dtype=jnp.float32)

    out = multi_head_attention(queries, keys, values, valid_lens,
                               w_q, w_k, w_v, w_o, num_heads=num_heads)
    out = jax.block_until_ready(out)

    ref = _reference(queries, keys, values, valid_lens,
                     w_q, w_k, w_v, w_o, num_heads)
    # bf16 MXU operands with f32 accumulation vs. pure-f32 reference -> ~1e-2 tolerance.
    np.testing.assert_allclose(np.asarray(out), np.asarray(ref), rtol=2e-2, atol=2e-2)

    print("KERNEL_OK")
</pallas_src>

<mosaic_0001>
module attributes {stable_mosaic.version = 11 : i64} {
  func.func @_mha_kernel(%arg0: i32, %arg1: memref<2xi32, #tpu.memory_space<smem>>, %arg2: memref<2x8x16xbf16, #tpu.memory_space<vmem>>, %arg3: memref<2x8x16xbf16, #tpu.memory_space<vmem>>, %arg4: memref<2x8x16xbf16, #tpu.memory_space<vmem>>, %arg5: memref<16x32xbf16, #tpu.memory_space<vmem>>, %arg6: memref<16x32xbf16, #tpu.memory_space<vmem>>, %arg7: memref<16x32xbf16, #tpu.memory_space<vmem>>, %arg8: memref<32x32xbf16, #tpu.memory_space<vmem>>, %arg9: memref<2x8x32xf32, #tpu.memory_space<vmem>>) attributes {dimension_semantics = [#tpu.dimension_semantics<parallel>], iteration_bounds = array<i64: 1>, scalar_prefetch = 1 : i64, scratch_operands = 0 : i64, tpu.core_type = #tpu.core_type<tc>, window_params = [{transform_indices = @transform_0, window_bounds = array<i64: 2, 8, 16>}, {transform_indices = @transform_1, window_bounds = array<i64: 2, 8, 16>}, {transform_indices = @transform_2, window_bounds = array<i64: 2, 8, 16>}, {pipeline_mode = #tpu.pipeline_mode<synchronous>, transform_indices = @transform_3, window_bounds = array<i64: 16, 32>}, {pipeline_mode = #tpu.pipeline_mode<synchronous>, transform_indices = @transform_4, window_bounds = array<i64: 16, 32>}, {pipeline_mode = #tpu.pipeline_mode<synchronous>, transform_indices = @transform_5, window_bounds = array<i64: 16, 32>}, {pipeline_mode = #tpu.pipeline_mode<synchronous>, transform_indices = @transform_6, window_bounds = array<i64: 32, 32>}, {transform_indices = @transform_7, window_bounds = array<i64: 2, 8, 32>}]} {
    %c2_i32 = arith.constant 2 : i32
    %0 = arith.muli %arg0, %c2_i32 : i32
    %c0 = arith.constant 0 : index
    %c0_0 = arith.constant 0 : index
    %c0_1 = arith.constant 0 : index
    %1 = vector.load %arg2[%c0, %c0_0, %c0_1] : memref<2x8x16xbf16, #tpu.memory_space<vmem>>, vector<2x8x16xbf16>
    %2 = vector.shape_cast %1 : vector<2x8x16xbf16> to vector<16x16xbf16>
    %c0_2 = arith.constant 0 : index
    %c0_3 = arith.constant 0 : index
    %3 = vector.load %arg5[%c0_2, %c0_3] : memref<16x32xbf16, #tpu.memory_space<vmem>>, vector<16x32xbf16>
    %cst = arith.constant dense<0.000000e+00> : vector<16x32xf32>
    %4 = tpu.matmul %2, %3, %cst {dimension_numbers = #tpu.dot_dimension_numbers<[1], [0], [0], [1], [0, 0, 1, 1], [], []>} : vector<16x16xbf16>, vector<16x32xbf16>, vector<16x32xf32> -> vector<16x32xf32>
    %c0_4 = arith.constant 0 : index
    %c0_5 = arith.constant 0 : index
    %c0_6 = arith.constant 0 : index
    %5 = vector.load %arg3[%c0_4, %c0_5, %c0_6] : memref<2x8x16xbf16, #tpu.memory_space<vmem>>, vector<2x8x16xbf16>
    %6 = vector.shape_cast %5 : vector<2x8x16xbf16> to vector<16x16xbf16>
    %c0_7 = arith.constant 0 : index
    %c0_8 = arith.constant 0 : index
    %7 = vector.load %arg6[%c0_7, %c0_8] : memref<16x32xbf16, #tpu.memory_space<vmem>>, vector<16x32xbf16>
    %cst_9 = arith.constant dense<0.000000e+00> : vector<16x32xf32>
    %8 = tpu.matmul %6, %7, %cst_9 {dimension_numbers = #tpu.dot_dimension_numbers<[1], [0], [0], [1], [0, 0, 1, 1], [], []>} : vector<16x16xbf16>, vector<16x32xbf16>, vector<16x32xf32> -> vector<16x32xf32>
    %c0_10 = arith.constant 0 : index
    %c0_11 = arith.constant 0 : index
    %c0_12 = arith.constant 0 : index
    %9 = vector.load %arg4[%c0_10, %c0_11, %c0_12] : memref<2x8x16xbf16, #tpu.memory_space<vmem>>, vector<2x8x16xbf16>
    %10 = vector.shape_cast %9 : vector<2x8x16xbf16> to vector<16x16xbf16>
    %c0_13 = arith.constant 0 : index
    %c0_14 = arith.constant 0 : index
    %11 = vector.load %arg7[%c0_13, %c0_14] : memref<16x32xbf16, #tpu.memory_space<vmem>>, vector<16x32xbf16>
    %cst_15 = arith.constant dense<0.000000e+00> : vector<16x32xf32>
    %12 = tpu.matmul %10, %11, %cst_15 {dimension_numbers = #tpu.dot_dimension_numbers<[1], [0], [0], [1], [0, 0, 1, 1], [], []>} : vector<16x16xbf16>, vector<16x32xbf16>, vector<16x32xf32> -> vector<16x32xf32>
    %13 = tpu.iota {dimensions = array<i32: 2>} : vector<2x8x8xi32>
    %14 = tpu.iota {dimensions = array<i32: 0>} : vector<2x8x8xi32>
    %c0_i32 = arith.constant 0 : i32
    %15 = vector.broadcast %c0_i32 : i32 to vector<2x8x8xi32>
    %16 = arith.cmpi eq, %14, %15 : vector<2x8x8xi32>
    %c0_i32_16 = arith.constant 0 : i32
    %17 = arith.addi %0, %c0_i32_16 : i32
    %18 = arith.index_cast %17 : i32 to index
    %19 = memref.load %arg1[%18] : memref<2xi32, #tpu.memory_space<smem>>
    %20 = vector.broadcast %19 : i32 to vector<2x8x8xi32>
    %21 = arith.cmpi slt, %13, %20 : vector<2x8x8xi32>
    %22 = arith.andi %16, %21 : vector<2x8x8xi1>
    %c1_i32 = arith.constant 1 : i32
    %23 = vector.broadcast %c1_i32 : i32 to vector<2x8x8xi32>
    %24 = arith.cmpi eq, %14, %23 : vector<2x8x8xi32>
    %c1_i32_17 = arith.constant 1 : i32
    %25 = arith.addi %0, %c1_i32_17 : i32
    %26 = arith.index_cast %25 : i32 to index
    %27 = memref.load %arg1[%26] : memref<2xi32, #tpu.memory_space<smem>>
    %28 = vector.broadcast %27 : i32 to vector<2x8x8xi32>
    %29 = arith.cmpi slt, %13, %28 : vector<2x8x8xi32>
    %30 = arith.andi %24, %29 : vector<2x8x8xi1>
    %31 = arith.ori %22, %30 : vector<2x8x8xi1>
    %c0_18 = arith.constant 0 : index
    %c0_19 = arith.constant 0 : index
    %32 = vector.load %arg8[%c0_18, %c0_19] : memref<32x32xbf16, #tpu.memory_space<vmem>>, vector<32x32xbf16>
    %cst_20 = arith.constant 0.000000e+00 : f32
    %33 = vector.broadcast %cst_20 : f32 to vector<16x32xf32>
    %34 = vector.extract_strided_slice %4 {offsets = [0, 0], sizes = [16, 8], strides = [1, 1]} : vector<16x32xf32> to vector<16x8xf32>
    %35 = vector.shape_cast %34 : vector<16x8xf32> to vector<2x8x8xf32>
    %36 = arith.truncf %35 : vector<2x8x8xf32> to vector<2x8x8xbf16>
    %37 = vector.extract_strided_slice %8 {offsets = [0, 0], sizes = [16, 8], strides = [1, 1]} : vector<16x32xf32> to vector<16x8xf32>
    %38 = vector.shape_cast %37 : vector<16x8xf32> to vector<2x8x8xf32>
    %39 = arith.truncf %38 : vector<2x8x8xf32> to vector<2x8x8xbf16>
    %40 = vector.extract_strided_slice %12 {offsets = [0, 0], sizes = [16, 8], strides = [1, 1]} : vector<16x32xf32> to vector<16x8xf32>
    %41 = vector.shape_cast %40 : vector<16x8xf32> to vector<2x8x8xf32>
    %42 = arith.truncf %41 : vector<2x8x8xf32> to vector<2x8x8xbf16>
    "tpu.trace_start"() <{level = 10 : i32, message = "bqd,bkd->bqk"}> : () -> ()
    %cst_21 = arith.constant dense<0.000000e+00> : vector<2x8x8xf32>
    %43 = tpu.matmul %36, %39, %cst_21 {dimension_numbers = #tpu.dot_dimension_numbers<[2], [2], [1], [1], [0, 0, 0, 1, 1, 1], [0], [0]>} : vector<2x8x8xbf16>, vector<2x8x8xbf16>, vector<2x8x8xf32> -> vector<2x8x8xf32>
    %cst_22 = arith.constant -1.000000e+06 : f32
    "tpu.trace_stop"() : () -> ()
    %44 = vector.broadcast %cst_22 : f32 to vector<2x8x8xf32>
    %45 = arith.select %31, %43, %44 : vector<2x8x8xi1>, vector<2x8x8xf32>
    %cst_23 = arith.constant dense<0xFF800000> : vector<2x8xf32>
    %46 = vector.multi_reduction <maximumf>, %45, %cst_23 [2] : vector<2x8x8xf32> to vector<2x8xf32>
    %47 = vector.shape_cast %46 : vector<2x8xf32> to vector<2x8x1xf32>
    %48 = vector.broadcast %47 : vector<2x8x1xf32> to vector<2x8x8xf32>
    %49 = arith.subf %45, %48 : vector<2x8x8xf32>
    %50 = math.exp %49 : vector<2x8x8xf32>
    %cst_24 = arith.constant dense<0.000000e+00> : vector<2x8xf32>
    %51 = vector.multi_reduction <add>, %50, %cst_24 [2] : vector<2x8x8xf32> to vector<2x8xf32>
    %52 = vector.shape_cast %51 : vector<2x8xf32> to vector<2x8x1xf32>
    %53 = tpu.reciprocal %52 {approx = true} : vector<2x8x1xf32> -> vector<2x8x1xf32>
    %54 = vector.broadcast %53 : vector<2x8x1xf32> to vector<2x8x8xf32>
    %55 = arith.mulf %50, %54 : vector<2x8x8xf32>
    %56 = arith.truncf %55 : vector<2x8x8xf32> to vector<2x8x8xbf16>
    "tpu.trace_start"() <{level = 10 : i32, message = "bqk,bkd->bqd"}> : () -> ()
    %cst_25 = arith.constant dense<0.000000e+00> : vector<2x8x8xf32>
    %57 = tpu.matmul %56, %42, %cst_25 {dimension_numbers = #tpu.dot_dimension_numbers<[2], [1], [1], [2], [0, 0, 0, 1, 1, 2], [0], [0]>} : vector<2x8x8xbf16>, vector<2x8x8xbf16>, vector<2x8x8xf32> -> vector<2x8x8xf32>
    "tpu.trace_stop"() : () -> ()
    %58 = vector.shape_cast %57 : vector<2x8x8xf32> to vector<16x8xf32>
    %59 = arith.truncf %58 : vector<16x8xf32> to vector<16x8xbf16>
    %60 = vector.extract_strided_slice %32 {offsets = [0, 0], sizes = [8, 32], strides = [1, 1]} : vector<32x32xbf16> to vector<8x32xbf16>
    %cst_26 = arith.constant dense<0.000000e+00> : vector<16x32xf32>
    %61 = tpu.matmul %59, %60, %cst_26 {dimension_numbers = #tpu.dot_dimension_numbers<[1], [0], [0], [1], [0, 0, 1, 1], [], []>} : vector<16x8xbf16>, vector<8x32xbf16>, vector<16x32xf32> -> vector<16x32xf32>
    %62 = arith.addf %33, %61 : vector<16x32xf32>
    %63 = vector.extract_strided_slice %4 {offsets = [0, 8], sizes = [16, 8], strides = [1, 1]} : vector<16x32xf32> to vector<16x8xf32>
    %64 = vector.shape_cast %63 : vector<16x8xf32> to vector<2x8x8xf32>
    %65 = arith.truncf %64 : vector<2x8x8xf32> to vector<2x8x8xbf16>
    %66 = vector.extract_strided_slice %8 {offsets = [0, 8], sizes = [16, 8], strides = [1, 1]} : vector<16x32xf32> to vector<16x8xf32>
    %67 = vector.shape_cast %66 : vector<16x8xf32> to vector<2x8x8xf32>
    %68 = arith.truncf %67 : vector<2x8x8xf32> to vector<2x8x8xbf16>
    %69 = vector.extract_strided_slice %12 {offsets = [0, 8], sizes = [16, 8], strides = [1, 1]} : vector<16x32xf32> to vector<16x8xf32>
    %70 = vector.shape_cast %69 : vector<16x8xf32> to vector<2x8x8xf32>
    %71 = arith.truncf %70 : vector<2x8x8xf32> to vector<2x8x8xbf16>
    "tpu.trace_start"() <{level = 10 : i32, message = "bqd,bkd->bqk"}> : () -> ()
    %cst_27 = arith.constant dense<0.000000e+00> : vector<2x8x8xf32>
    %72 = tpu.matmul %65, %68, %cst_27 {dimension_numbers = #tpu.dot_dimension_numbers<[2], [2], [1], [1], [0, 0, 0, 1, 1, 1], [0], [0]>} : vector<2x8x8xbf16>, vector<2x8x8xbf16>, vector<2x8x8xf32> -> vector<2x8x8xf32>
    %cst_28 = arith.constant -1.000000e+06 : f32
    "tpu.trace_stop"() : () -> ()
    %73 = vector.broadcast %cst_28 : f32 to vector<2x8x8xf32>
    %74 = arith.select %31, %72, %73 : vector<2x8x8xi1>, vector<2x8x8xf32>
    %cst_29 = arith.constant dense<0xFF800000> : vector<2x8xf32>
    %75 = vector.multi_reduction <maximumf>, %74, %cst_29 [2] : vector<2x8x8xf32> to vector<2x8xf32>
    %76 = vector.shape_cast %75 : vector<2x8xf32> to vector<2x8x1xf32>
    %77 = vector.broadcast %76 : vector<2x8x1xf32> to vector<2x8x8xf32>
    %78 = arith.subf %74, %77 : vector<2x8x8xf32>
    %79 = math.exp %78 : vector<2x8x8xf32>
    %cst_30 = arith.constant dense<0.000000e+00> : vector<2x8xf32>
    %80 = vector.multi_reduction <add>, %79, %cst_30 [2] : vector<2x8x8xf32> to vector<2x8xf32>
    %81 = vector.shape_cast %80 : vector<2x8xf32> to vector<2x8x1xf32>
    %82 = tpu.reciprocal %81 {approx = true} : vector<2x8x1xf32> -> vector<2x8x1xf32>
    %83 = vector.broadcast %82 : vector<2x8x1xf32> to vector<2x8x8xf32>
    %84 = arith.mulf %79, %83 : vector<2x8x8xf32>
    %85 = arith.truncf %84 : vector<2x8x8xf32> to vector<2x8x8xbf16>
    "tpu.trace_start"() <{level = 10 : i32, message = "bqk,bkd->bqd"}> : () -> ()
    %cst_31 = arith.constant dense<0.000000e+00> : vector<2x8x8xf32>
    %86 = tpu.matmul %85, %71, %cst_31 {dimension_numbers = #tpu.dot_dimension_numbers<[2], [1], [1], [2], [0, 0, 0, 1, 1, 2], [0], [0]>} : vector<2x8x8xbf16>, vector<2x8x8xbf16>, vector<2x8x8xf32> -> vector<2x8x8xf32>
    "tpu.trace_stop"() : () -> ()
    %87 = vector.shape_cast %86 : vector<2x8x8xf32> to vector<16x8xf32>
    %88 = arith.truncf %87 : vector<16x8xf32> to vector<16x8xbf16>
    %89 = vector.extract_strided_slice %32 {offsets = [8, 0], sizes = [8, 32], strides = [1, 1]} : vector<32x32xbf16> to vector<8x32xbf16>
    %cst_32 = arith.constant dense<0.000000e+00> : vector<16x32xf32>
    %90 = tpu.matmul %88, %89, %cst_32 {dimension_numbers = #tpu.dot_dimension_numbers<[1], [0], [0], [1], [0, 0, 1, 1], [], []>} : vector<16x8xbf16>, vector<8x32xbf16>, vector<16x32xf32> -> vector<16x32xf32>
    %91 = arith.addf %62, %90 : vector<16x32xf32>
    %92 = vector.extract_strided_slice %4 {offsets = [0, 16], sizes = [16, 8], strides = [1, 1]} : vector<16x32xf32> to vector<16x8xf32>
    %93 = vector.shape_cast %92 : vector<16x8xf32> to vector<2x8x8xf32>
    %94 = arith.truncf %93 : vector<2x8x8xf32> to vector<2x8x8xbf16>
    %95 = vector.extract_strided_slice %8 {offsets = [0, 16], sizes = [16, 8], strides = [1, 1]} : vector<16x32xf32> to vector<16x8xf32>
    %96 = vector.shape_cast %95 : vector<16x8xf32> to vector<2x8x8xf32>
    %97 = arith.truncf %96 : vector<2x8x8xf32> to vector<2x8x8xbf16>
    %98 = vector.extract_strided_slice %12 {offsets = [0, 16], sizes = [16, 8], strides = [1, 1]} : vector<16x32xf32> to vector<16x8xf32>
    %99 = vector.shape_cast %98 : vector<16x8xf32> to vector<2x8x8xf32>
    %100 = arith.truncf %99 : vector<2x8x8xf32> to vector<2x8x8xbf16>
    "tpu.trace_start"() <{level = 10 : i32, message = "bqd,bkd->bqk"}> : () -> ()
    %cst_33 = arith.constant dense<0.000000e+00> : vector<2x8x8xf32>
    %101 = tpu.matmul %94, %97, %cst_33 {dimension_numbers = #tpu.dot_dimension_numbers<[2], [2], [1], [1], [0, 0, 0, 1, 1, 1], [0], [0]>} : vector<2x8x8xbf16>, vector<2x8x8xbf16>, vector<2x8x8xf32> -> vector<2x8x8xf32>
    %cst_34 = arith.constant -1.000000e+06 : f32
    "tpu.trace_stop"() : () -> ()
    %102 = vector.broadcast %cst_34 : f32 to vector<2x8x8xf32>
    %103 = arith.select %31, %101, %102 : vector<2x8x8xi1>, vector<2x8x8xf32>
    %cst_35 = arith.constant dense<0xFF800000> : vector<2x8xf32>
    %104 = vector.multi_reduction <maximumf>, %103, %cst_35 [2] : vector<2x8x8xf32> to vector<2x8xf32>
    %105 = vector.shape_cast %104 : vector<2x8xf32> to vector<2x8x1xf32>
    %106 = vector.broadcast %105 : vector<2x8x1xf32> to vector<2x8x8xf32>
    %107 = arith.subf %103, %106 : vector<2x8x8xf32>
    %108 = math.exp %107 : vector<2x8x8xf32>
    %cst_36 = arith.constant dense<0.000000e+00> : vector<2x8xf32>
    %109 = vector.multi_reduction <add>, %108, %cst_36 [2] : vector<2x8x8xf32> to vector<2x8xf32>
    %110 = vector.shape_cast %109 : vector<2x8xf32> to vector<2x8x1xf32>
    %111 = tpu.reciprocal %110 {approx = true} : vector<2x8x1xf32> -> vector<2x8x1xf32>
    %112 = vector.broadcast %111 : vector<2x8x1xf32> to vector<2x8x8xf32>
    %113 = arith.mulf %108, %112 : vector<2x8x8xf32>
    %114 = arith.truncf %113 : vector<2x8x8xf32> to vector<2x8x8xbf16>
    "tpu.trace_start"() <{level = 10 : i32, message = "bqk,bkd->bqd"}> : () -> ()
    %cst_37 = arith.constant dense<0.000000e+00> : vector<2x8x8xf32>
    %115 = tpu.matmul %114, %100, %cst_37 {dimension_numbers = #tpu.dot_dimension_numbers<[2], [1], [1], [2], [0, 0, 0, 1, 1, 2], [0], [0]>} : vector<2x8x8xbf16>, vector<2x8x8xbf16>, vector<2x8x8xf32> -> vector<2x8x8xf32>
    "tpu.trace_stop"() : () -> ()
    %116 = vector.shape_cast %115 : vector<2x8x8xf32> to vector<16x8xf32>
    %117 = arith.truncf %116 : vector<16x8xf32> to vector<16x8xbf16>
    %118 = vector.extract_strided_slice %32 {offsets = [16, 0], sizes = [8, 32], strides = [1, 1]} : vector<32x32xbf16> to vector<8x32xbf16>
    %cst_38 = arith.constant dense<0.000000e+00> : vector<16x32xf32>
    %119 = tpu.matmul %117, %118, %cst_38 {dimension_numbers = #tpu.dot_dimension_numbers<[1], [0], [0], [1], [0, 0, 1, 1], [], []>} : vector<16x8xbf16>, vector<8x32xbf16>, vector<16x32xf32> -> vector<16x32xf32>
    %120 = arith.addf %91, %119 : vector<16x32xf32>
    %121 = vector.extract_strided_slice %4 {offsets = [0, 24], sizes = [16, 8], strides = [1, 1]} : vector<16x32xf32> to vector<16x8xf32>
    %122 = vector.shape_cast %121 : vector<16x8xf32> to vector<2x8x8xf32>
    %123 = arith.truncf %122 : vector<2x8x8xf32> to vector<2x8x8xbf16>
    %124 = vector.extract_strided_slice %8 {offsets = [0, 24], sizes = [16, 8], strides = [1, 1]} : vector<16x32xf32> to vector<16x8xf32>
    %125 = vector.shape_cast %124 : vector<16x8xf32> to vector<2x8x8xf32>
    %126 = arith.truncf %125 : vector<2x8x8xf32> to vector<2x8x8xbf16>
    %127 = vector.extract_strided_slice %12 {offsets = [0, 24], sizes = [16, 8], strides = [1, 1]} : vector<16x32xf32> to vector<16x8xf32>
    %128 = vector.shape_cast %127 : vector<16x8xf32> to vector<2x8x8xf32>
    %129 = arith.truncf %128 : vector<2x8x8xf32> to vector<2x8x8xbf16>
    "tpu.trace_start"() <{level = 10 : i32, message = "bqd,bkd->bqk"}> : () -> ()
    %cst_39 = arith.constant dense<0.000000e+00> : vector<2x8x8xf32>
    %130 = tpu.matmul %123, %126, %cst_39 {dimension_numbers = #tpu.dot_dimension_numbers<[2], [2], [1], [1], [0, 0, 0, 1, 1, 1], [0], [0]>} : vector<2x8x8xbf16>, vector<2x8x8xbf16>, vector<2x8x8xf32> -> vector<2x8x8xf32>
    %cst_40 = arith.constant -1.000000e+06 : f32
    "tpu.trace_stop"() : () -> ()
    %131 = vector.broadcast %cst_40 : f32 to vector<2x8x8xf32>
    %132 = arith.select %31, %130, %131 : vector<2x8x8xi1>, vector<2x8x8xf32>
    %cst_41 = arith.constant dense<0xFF800000> : vector<2x8xf32>
    %133 = vector.multi_reduction <maximumf>, %132, %cst_41 [2] : vector<2x8x8xf32> to vector<2x8xf32>
    %134 = vector.shape_cast %133 : vector<2x8xf32> to vector<2x8x1xf32>
    %135 = vector.broadcast %134 : vector<2x8x1xf32> to vector<2x8x8xf32>
    %136 = arith.subf %132, %135 : vector<2x8x8xf32>
    %137 = math.exp %136 : vector<2x8x8xf32>
    %cst_42 = arith.constant dense<0.000000e+00> : vector<2x8xf32>
    %138 = vector.multi_reduction <add>, %137, %cst_42 [2] : vector<2x8x8xf32> to vector<2x8xf32>
    %139 = vector.shape_cast %138 : vector<2x8xf32> to vector<2x8x1xf32>
    %140 = tpu.reciprocal %139 {approx = true} : vector<2x8x1xf32> -> vector<2x8x1xf32>
    %141 = vector.broadcast %140 : vector<2x8x1xf32> to vector<2x8x8xf32>
    %142 = arith.mulf %137, %141 : vector<2x8x8xf32>
    %143 = arith.truncf %142 : vector<2x8x8xf32> to vector<2x8x8xbf16>
    "tpu.trace_start"() <{level = 10 : i32, message = "bqk,bkd->bqd"}> : () -> ()
    %cst_43 = arith.constant dense<0.000000e+00> : vector<2x8x8xf32>
    %144 = tpu.matmul %143, %129, %cst_43 {dimension_numbers = #tpu.dot_dimension_numbers<[2], [1], [1], [2], [0, 0, 0, 1, 1, 2], [0], [0]>} : vector<2x8x8xbf16>, vector<2x8x8xbf16>, vector<2x8x8xf32> -> vector<2x8x8xf32>
    "tpu.trace_stop"() : () -> ()
    %145 = vector.shape_cast %144 : vector<2x8x8xf32> to vector<16x8xf32>
    %146 = arith.truncf %145 : vector<16x8xf32> to vector<16x8xbf16>
    %147 = vector.extract_strided_slice %32 {offsets = [24, 0], sizes = [8, 32], strides = [1, 1]} : vector<32x32xbf16> to vector<8x32xbf16>
    %cst_44 = arith.constant dense<0.000000e+00> : vector<16x32xf32>
    %148 = tpu.matmul %146, %147, %cst_44 {dimension_numbers = #tpu.dot_dimension_numbers<[1], [0], [0], [1], [0, 0, 1, 1], [], []>} : vector<16x8xbf16>, vector<8x32xbf16>, vector<16x32xf32> -> vector<16x32xf32>
    %149 = arith.addf %120, %148 : vector<16x32xf32>
    %150 = vector.shape_cast %149 : vector<16x32xf32> to vector<2x8x32xf32>
    %c0_45 = arith.constant 0 : index
    %c0_46 = arith.constant 0 : index
    %c0_47 = arith.constant 0 : index
    %151 = vector.load %arg9[%c0_45, %c0_46, %c0_47] : memref<2x8x32xf32, #tpu.memory_space<vmem>>, vector<2x8x32xf32>
    tpu.vector_store %arg9[%c0_45, %c0_46, %c0_47], %150 {strides = array<i32>} : memref<2x8x32xf32, #tpu.memory_space<vmem>>, vector<2x8x32xf32>,
    return
  }
  func.func @transform_0(%arg0: i32, %arg1: memref<2xi32, #tpu.memory_space<smem>>) -> (i32, i32, i32) {
    %c0_i32 = arith.constant 0 : i32
    %c0_i32_0 = arith.constant 0 : i32
    %c0_i32_1 = arith.constant 0 : i32
    return %arg0, %c0_i32, %c0_i32_0 : i32, i32, i32
  }
  func.func @transform_1(%arg0: i32, %arg1: memref<2xi32, #tpu.memory_space<smem>>) -> (i32, i32, i32) {
    %c0_i32 = arith.constant 0 : i32
    %c0_i32_0 = arith.constant 0 : i32
    %c0_i32_1 = arith.constant 0 : i32
    return %arg0, %c0_i32, %c0_i32_0 : i32, i32, i32
  }
  func.func @transform_2(%arg0: i32, %arg1: memref<2xi32, #tpu.memory_space<smem>>) -> (i32, i32, i32) {
    %c0_i32 = arith.constant 0 : i32
    %c0_i32_0 = arith.constant 0 : i32
    %c0_i32_1 = arith.constant 0 : i32
    return %arg0, %c0_i32, %c0_i32_0 : i32, i32, i32
  }
  func.func @transform_3(%arg0: i32, %arg1: memref<2xi32, #tpu.memory_space<smem>>) -> (i32, i32) {
    %c0_i32 = arith.constant 0 : i32
    %c0_i32_0 = arith.constant 0 : i32
    %c0_i32_1 = arith.constant 0 : i32
    return %c0_i32, %c0_i32_0 : i32, i32
  }
  func.func @transform_4(%arg0: i32, %arg1: memref<2xi32, #tpu.memory_space<smem>>) -> (i32, i32) {
    %c0_i32 = arith.constant 0 : i32
    %c0_i32_0 = arith.constant 0 : i32
    %c0_i32_1 = arith.constant 0 : i32
    return %c0_i32, %c0_i32_0 : i32, i32
  }
  func.func @transform_5(%arg0: i32, %arg1: memref<2xi32, #tpu.memory_space<smem>>) -> (i32, i32) {
    %c0_i32 = arith.constant 0 : i32
    %c0_i32_0 = arith.constant 0 : i32
    %c0_i32_1 = arith.constant 0 : i32
    return %c0_i32, %c0_i32_0 : i32, i32
  }
  func.func @transform_6(%arg0: i32, %arg1: memref<2xi32, #tpu.memory_space<smem>>) -> (i32, i32) {
    %c0_i32 = arith.constant 0 : i32
    %c0_i32_0 = arith.constant 0 : i32
    %c0_i32_1 = arith.constant 0 : i32
    return %c0_i32, %c0_i32_0 : i32, i32
  }
  func.func @transform_7(%arg0: i32, %arg1: memref<2xi32, #tpu.memory_space<smem>>) -> (i32, i32, i32) {
    %c0_i32 = arith.constant 0 : i32
    %c0_i32_0 = arith.constant 0 : i32
    %c0_i32_1 = arith.constant 0 : i32
    return %arg0, %c0_i32, %c0_i32_0 : i32, i32, i32
  }
}

</mosaic_0001>

<bundles_post_ra>
// kernel: tpu_custom_call.1
= control target key start
LH: loop header
LB: loop body
LE: loop exit
PB: predicated region body
PF: predicated region fallthrough
CT: control target
= control target key end

     0   :  { %s2240_s0 = inlined_call_operand.hbm [shape: s32[2], index: 0, kind: input, shape index: {}]   ;;  %s2241_s1 = inlined_call_operand.hbm [shape: bf16[2,8,16], index: 1, kind: input, shape index: {}]   ;;  %s2242_s2 = inlined_call_operand.hbm [shape: bf16[2,8,16], index: 2, kind: input, shape index: {}]   ;;  %s2243_s3 = inlined_call_operand.vmem [shape: bf16[2,8,16], index: 3, kind: input, shape index: {}]   ;;  %s2244_s4 = inlined_call_operand.hbm [shape: bf16[16,32], index: 4, kind: input, shape index: {}]   ;;  %s2245_s5 = inlined_call_operand.hbm [shape: bf16[16,32], index: 5, kind: input, shape index: {}]   ;;  %s2246_s6 = inlined_call_operand.hbm [shape: bf16[16,32], index: 6, kind: input, shape index: {}]   ;;  %s2247_s7 = inlined_call_operand.vmem [shape: bf16[32,32], index: 7, kind: input, shape index: {}]   ;;  %s2248_s8 = inlined_call_operand.hbm [shape: f32[2,8,32], index: 8, kind: output, shape index: {}]  }
   0x1   :  { %s1687_s29 = scalar_lea.hbm %s2240_s0, 16 }
   0x2   :  { %p1688_p0 = scmp.ne.s32.totalorder %s2240_s0, %s1687_s29  ;;  %p1691_p1 = scmp.lt.u32.totalorder %s1687_s29, %s2240_s0 }
   0x4   :  { %p1693_p2 = pnand %p1691_p1, %p1688_p0 }
   0x6   :  { %1696 = shalt.err (!%p1693_p2)  }
   0x7   :  { %s1839_s12 = smov [#allocation3]  }
   0x8   :  { %14 = dma.hbm_to_smem %s2240_s0, 16, %s1839_s12, [#allocation2] }
   0x9   :  { %1829 = dma.done.wait [#allocation2], 16 }
   0xa   :  { %1830 = vsyncadd [#allocation2], 4294967280 }
   0xb   :  { %16 = sfence }
   0xc   :  { %17 = vsyncpa [#allocation5], 0 }
   0xd   :  { %18 = vsyncpa [#allocation8], 0 }
   0xe   :  { %19 = vsyncpa [#allocation11], 0 }
   0xf   :  { %20 = vsyncpa [#allocation6], 0  ;;  %s1840_s15 = smov [#allocation7]   ;;  %s1841_s17 = smov [#allocation10]  }
  0x10   :  { %s38_s16 = sshll.u32 %s1840_s15, 4  ;;  %s64_s18 = sshll.u32 %s1841_s17, 4  ;;  %s39_s16 = int_to_ptr.vmem [resolvable:$true] %s38_s16  ;;  %s1912_s18 = int_to_ptr.vmem [resolvable:$true] %s64_s18 }
  0x11   :  { %s1697_s21 = scalar_lea.hbm %s2242_s2, 128 }
  0x12   :  { %p1698_p3 = scmp.ne.s32.totalorder %s2242_s2, %s1697_s21  ;;  %p1701_p4 = scmp.lt.u32.totalorder %s1697_s21, %s2242_s2 }
  0x14   :  { %p1703_p5 = pnand %p1701_p4, %p1698_p3 }
  0x16   :  { %1706 = shalt.err (!%p1703_p5)
}
  0x17   :  { %s1707_s25 = scalar_lea.vmem %s39_s16, 128  ;;  %p1712_p7 = scmp.lt.s32.totalorder %s39_s16, %s39_s16 }
  0x18   :  { %p1708_p6 = scmp.ne.s32.totalorder %s39_s16, %s1707_s25  ;;  %p1713_p8 = scmp.lt.s32.totalorder %s1707_s25, %s1707_s25 }
  0x1a   :  { %p1714_p9 = por %p1713_p8, %p1712_p7 }
  0x1c   :  { %p1715_p10 = pnand %p1714_p9, %p1708_p6 }
  0x1e   :  { %1718 = shalt.err (!%p1715_p10)
}
  0x1f   :  { %s1842_s26 = smov 64   ;;  %s1843_s27 = smov 4  }
  0x20   :  { %44 = dma.hbm_to_vmem [thread:$0]  %s2242_s2, 128, %s39_s16, [#allocation8], %s1842_s26, %s1842_s26, %s1843_s27  }
  0x21   :  { %s1719_s10 = scalar_lea.hbm %s2245_s5, 128 }
  0x22   :  { %p1720_p11 = scmp.ne.s32.totalorder %s2245_s5, %s1719_s10  ;;  %p1723_p12 = scmp.lt.u32.totalorder %s1719_s10, %s2245_s5 }
  0x24   :  { %p1725_p13 = pnand %p1723_p12, %p1720_p11 }
  0x26   :  { %1728 = shalt.err (!%p1725_p13)
}
  0x27   :  { %s1729_s15 = scalar_lea.vmem %s1912_s18, 128  ;;  %p1734_p1 = scmp.lt.s32.totalorder %s1912_s18, %s1912_s18 }
  0x28   :  { %p1730_p0 = scmp.ne.s32.totalorder %s1912_s18, %s1729_s15  ;;  %p1735_p2 = scmp.lt.s32.totalorder %s1729_s15, %s1729_s15 }
  0x2a   :  { %p1736_p3 = por %p1735_p2, %p1734_p1 }
  0x2c   :  { %p1737_p4 = pnand %p1736_p3, %p1730_p0 }
  0x2e   :  { %1740 = shalt.err (!%p1737_p4)
}
  0x2f   :  { %70 = dma.hbm_to_vmem [thread:$0]  %s2245_s5, 128, %s1912_s18, [#allocation11], %s1842_s26, %s1842_s26, %s1843_s27  }
  0x30   :  { %s1844_s17 = smov [#allocation4]   ;;  %s1845_s20 = smov [#allocation9]  }
  0x31   :  { %s26_s19 = sshll.u32 %s1844_s17, 4  ;;  %s52_s21 = sshll.u32 %s1845_s20, 4  ;;  %s27_s19 = int_to_ptr.vmem [resolvable:$true] %s26_s19  ;;  %s1949_s21 = int_to_ptr.vmem [resolvable:$true] %s52_s21 }
  0x32   :  { %s1741_s23 = scalar_lea.hbm %s2241_s1, 128 }
  0x33   :  { %p1742_p5 = scmp.ne.s32.totalorder %s2241_s1, %s1741_s23  ;;  %p1745_p6 = scmp.lt.u32.totalorder %s1741_s23, %s2241_s1 }
  0x35   :  { %p1747_p7 = pnand %p1745_p6, %p1742_p5 }
  0x37   :  { %1750 = shalt.err (!%p1747_p7)
}
  0x38   :  { %s1751_s5 = scalar_lea.vmem %s27_s19, 128  ;;  %p1756_p9 = scmp.lt.s32.totalorder %s27_s19, %s27_s19 }
  0x39   :  { %p1752_p8 = scmp.ne.s32.totalorder %s27_s19, %s1751_s5  ;;  %p1757_p10 = scmp.lt.s32.totalorder %s1751_s5, %s1751_s5 }
  0x3b   :  { %p1758_p11 = por %p1757_p10, %p1756_p9 }
  0x3d   :  { %p1759_p12 = pnand %p1758_p11, %p1752_p8 }
  0x3f   :  { %1762 = shalt.err (!%p1759_p12)
}
  0x40   :  { %32 = dma.hbm_to_vmem [thread:$0]  %s2241_s1, 128, %s27_s19, [#allocation5], %s1842_s26, %s1842_s26, %s1843_s27  }
  0x41   :  { %s1763_s11 = scalar_lea.hbm %s2244_s4, 128 }
  0x42   :  { %p1764_p13 = scmp.ne.s32.totalorder %s2244_s4, %s1763_s11  ;;  %p1767_p0 = scmp.lt.u32.totalorder %s1763_s11, %s2244_s4 }
  0x44   :  { %p1769_p1 = pnand %p1767_p0, %p1764_p13 }
  0x46   :  { %1772 = shalt.err (!%p1769_p1)
}
  0x47   :  { %s1773_s2 = scalar_lea.vmem %s1949_s21, 128  ;;  %p1778_p3 = scmp.lt.s32.totalorder %s1949_s21, %s1949_s21 }
  0x48   :  { %p1774_p2 = scmp.ne.s32.totalorder %s1949_s21, %s1773_s2  ;;  %p1779_p4 = scmp.lt.s32.totalorder %s1773_s2, %s1773_s2 }
  0x4a   :  { %p1780_p5 = por %p1779_p4, %p1778_p3 }
  0x4c   :  { %p1781_p6 = pnand %p1780_p5, %p1774_p2 }
  0x4e   :  { %1784 = shalt.err (!%p1781_p6)
}
  0x4f   :  { %58 = dma.hbm_to_vmem [thread:$0]  %s2244_s4, 128, %s1949_s21, [#allocation8], %s1842_s26, %s1842_s26, %s1843_s27  }
  0x50   :  { %s1846_s17 = smov [#allocation12]   ;;  %s1785_s0 = scalar_lea.hbm %s2246_s6, 128 }
  0x51   :  { %s76_s19 = sshll.u32 %s1846_s17, 4  ;;  %p1786_p7 = scmp.ne.s32.totalorder %s2246_s6, %s1785_s0  ;;  %s77_s19 = int_to_ptr.vmem [resolvable:$true] %s76_s19 }
  0x52   :  { %p1789_p8 = scmp.lt.u32.totalorder %s1785_s0, %s2246_s6 }
  0x54   :  { %p1791_p9 = pnand %p1789_p8, %p1786_p7 }
  0x56   :  { %1794 = shalt.err (!%p1791_p9)
}
  0x57   :  { %s1795_s29 = scalar_lea.vmem %s77_s19, 128  ;;  %p1800_p11 = scmp.lt.s32.totalorder %s77_s19, %s77_s19 }
  0x58   :  { %p1796_p10 = scmp.ne.s32.totalorder %s77_s19, %s1795_s29  ;;  %p1801_p12 = scmp.lt.s32.totalorder %s1795_s29, %s1795_s29 }
  0x5a   :  { %p1802_p13 = por %p1801_p12, %p1800_p11 }
  0x5c   :  { %p1803_p0 = pnand %p1802_p13, %p1796_p10 }
  0x5e   :  { %1806 = shalt.err (!%p1803_p0)
}
  0x5f   :  { %82 = dma.hbm_to_vmem [thread:$0]  %s2246_s6, 128, %s77_s19, [#allocation11], %s1842_s26, %s1842_s26, %s1843_s27  }
  0x60   :  { %1831 = dma.done.wait [#allocation5], 128  }
  0x61   :  { %1832 = vsyncadd [#allocation5], 4294967168 }
  0x62   :  { %1833 = dma.done.wait [#allocation8], 256  }
  0x63   :  { %1834 = vsyncadd [#allocation8], 4294967040 }
  0x64   :  { %1835 = dma.done.wait [#allocation11], 256  }
  0x65   :  { %1836 = vsyncadd [#allocation11], 4294967040  ;;  %v1847_v0 = vmov 0.0   ;;  %vm1848_vm0 = vmmov 0   ;;  %v1649_v1 = vld [vmem:[#allocation10] sm:$0xff]   ;;  %v1650_v2 = vld [vmem:[#allocation7] sm:$0xff]   ;;  %v280_v29 = vlaneseq }
  0x66   :  { %1489 = vmatprep.subr.bf16.mxu1 %v1847_v0  ;;  %1491 = vmatprep.mubr.msk.bf16.mxu1 %vm1848_vm0, %v1847_v0  ;;  %vm117_vm1 = vcmask 130048   ;;  %v1651_v3 = vld [vmem:[#allocation9] sm:$0xff]   ;;  %v1652_v4 = vld [vmem:[#allocation4] sm:$0xff]   ;;  %v1654_v6 = vld [vmem:[%s2243_s3] sm:$0xff]   ;;  %vm305_vm2 = vcmask 64512   ;;  %s1849_s3 = smov 120  }
  0x67   :  { %1483 = vmatprep.subr.bf16.mxu0 %v1847_v0  ;;  %1485 = vmatprep.mubr.msk.bf16.mxu0 %vm1848_vm0, %v1847_v0  ;;  %v1653_v5 = vld [vmem:[#allocation12] sm:$0xff]   ;;  %vm427_vm3 = vcmask 1043456   ;;  %s1416_s27 = sld [smem:[#allocation3 + $0x1]]  ;;  %v281_v31 = vand.u32 127, %v280_v29  ;;  %s282_s5 = sld [smem:[#allocation3]]  ;;  %vm1385_vm6 = vcmask 261120  }
  0x68   :  { %1490 = vmatpush3.bf16.msra.mxu1 %v1649_v1  ;;  %1484 = vmatpush3.bf16.msra.mxu0 %v1651_v3  ;;  %s1850_s18 = smov 112   ;;  %s1851_s10 = smov 104  }
  0x69   :  { %1501 = vmatprep.subr.bf16.mxu1 %v1847_v0  ;;  %1495 = vmatprep.subr.bf16.mxu0 %v1847_v0  ;;  %s1852_s1 = smov [#allocation13]  }
  0x6a   :  { %s1393_s16 = sshll.u32 %s1852_s1, 4  ;;  %s1394_s16 = int_to_ptr.vmem [resolvable:$true] %s1393_s16 }
  0x6b   :  { %1492 = vmatmul.mubr.msk.bf16.vlgmr.msra.gmra.mrb[0].mxu1 %vm117_vm1, %v1650_v2  ;;  %1486 = vmatmul.mubr.msk.bf16.vlgmr.msra.gmra.mrb[0].mxu0 %vm117_vm1, %v1652_v4  ;;  %p1812_p2 = scmp.lt.s32.totalorder %s1394_s16, %s1394_s16 }
  0x6c   :  { %1503 = vmatprep.mubr.msk.bf16.mxu1 %vm1848_vm0, %v1847_v0  ;;  %1496 = vmatpush3.bf16.msra.mxu0 %v1653_v5 }
  0x6d   :  { %1497 = vmatprep.mubr.msk.bf16.mxu0 %vm1848_vm0, %v1847_v0  ;;  %1507 = vmatprep.subr.bf16.mxu0 %v1847_v0  ;;  %v289_v30 = vstv %s1416_s27  ;;  %v283_v46 = vstv %s282_s5 }
  0x6e   :  { %vm2055_vm4 = vcmp.lt.s32.totalorder %v281_v31, %v289_v30  ;;  %vm2062_vm5 = vcmp.lt.s32.totalorder %v281_v31, %v283_v46 }
  0x73   :  { %1498 = vmatmul.mubr.msk.bf16.vlgmr.msra.gmra.mrb[4].mxu0 %vm117_vm1, %v1654_v6 }
  0x74   :  { %1509 = vmatprep.mubr.msk.bf16.mxu0 %vm1848_vm0, %v1847_v0 }
 0x13e   :  { %v214_v7 = vpop.f32.mrb[0].mxu1  ;;  %v155_v11 = vpop.f32.mrb[0].mxu0 }
 0x13f   :  { %v2019_v8 = vpack.c.bf16 %v214_v7, %v214_v7  ;;  %v1493_v9 = vpop.f32.mrb[1].mxu1  ;;  %v1487_v15 = vpop.f32.mrb[1].mxu0  ;;  %v2032_v20 = vpack.c.bf16 %v155_v11, %v155_v11 }
 0x140   :  { %v217_v10 = vpop.f32.mrb[2].mxu1  ;;  %v158_v16 = vpop.f32.mrb[2].mxu0 }
 0x141   :  { %v2021_v12 = vpack.c.bf16 %v217_v10, %v217_v10  ;;  %v1494_v13 = vpop.f32.mrb[3].mxu1  ;;  %v310_v14 = vsel %vm305_vm2, %v2019_v8, 0  ;;  %v2029_v18 = vpack.c.bf16 %v158_v16, %v158_v16  ;;  %v1488_v19 = vpop.f32.mrb[3].mxu0 }
 0x142   :  { %1502 = vmatpush3.bf16.xpose.msra.mxu1 %v310_v14 }
 0x143   :  { %574 = vrot.lane.b32.xlu1 %v2021_v12, %s1849_s3  ;;  %v356_v17 = vsel %vm305_vm2, %v2021_v12, 0  ;;  %1513 = vmatprep.subr.bf16.mxu1 %v1847_v0 }
 0x144   :  { %1508 = vmatpush3.bf16.xpose.msra.mxu0 %v356_v17 }
 0x145   :  { %1519 = vmatprep.subr.bf16.mxu0 %v1847_v0 }
 0x146   :  { %v273_v21 = vpop.f32.mrb[4].mxu0 }
 0x147   :  { %571 = vrot.lane.b32.xlu1 %v2029_v18, %s1849_s3  ;;  %v2045_v22 = vpack.c.bf16 %v273_v21, %v273_v21  ;;  %v1499_v23 = vpop.f32.mrb[5].mxu0 }
 0x148   :  { %v276_v24 = vpop.f32.mrb[6].mxu0 }
 0x149   :  { %1504 = vmatmul.mubr.msk.bf16.vlgmr.msra.gmra.mrb[4].mxu1 %vm305_vm2, %v2032_v20  ;;  %v2047_v25 = vpack.c.bf16 %v276_v24, %v276_v24  ;;  %v1500_v26 = vpop.f32.mrb[7].mxu0  ;;  %v429_v27 = vsel %vm427_vm3, %v2045_v22, 0 }
 0x14a   :  { %1515 = vmatprep.mubr.msk.bf16.mxu1 %vm1848_vm0, %v1847_v0  ;;  %1514 = vmatpush3.bf16.msra.mxu1 %v429_v27 }
 0x14b   :  { %1510 = vmatmul.mubr.msk.bf16.vlgmr.msra.gmra.mrb[8].mxu0 %vm305_vm2, %v2029_v18  ;;  %v475_v28 = vsel %vm427_vm3, %v2047_v25, 0  ;;  %1525 = vmatprep.subr.bf16.mxu1 %v1847_v0 }
 0x14c   :  { %1521 = vmatprep.mubr.msk.bf16.mxu0 %vm1848_vm0, %v1847_v0  ;;  %1520 = vmatpush3.bf16.msra.mxu0 %v475_v28 }
 0x14d   :  { %1531 = vmatprep.subr.bf16.mxu0 %v1847_v0 }
 0x1b5   :  { %v575_v58 = vpop.permute.xlu1 %574 }
 0x1b6   :  { %v580_v60 = vsel %vm305_vm2, %v575_v58, 0 }
 0x1b9   :  { %v572_v63 = vpop.permute.xlu1 %571 }
 0x21c   :  { %v346_v32 = vpop.f32.mrb[4].mxu1 }
 0x21d   :  { %v1505_v34 = vpop.f32.mrb[5].mxu1  ;;  %v398_v50 = vsel %vm2062_vm5, %v346_v32, -1000000.0 }
 0x21e   :  { %v349_v35 = vpop.f32.mrb[6].mxu1  ;;  %v392_v36 = vpop.f32.mrb[8].mxu0  ;;  %v400_v51 = vsel %vm305_vm2, %v398_v50, -inf }
 0x21f   :  { %v399_v37 = vsel %vm2055_vm4, %v392_v36, -1000000.0  ;;  %v1506_v38 = vpop.f32.mrb[7].mxu1  ;;  %v1511_v39 = vpop.f32.mrb[9].mxu0 }
 0x220   :  { %v395_v40 = vpop.f32.mrb[10].mxu0  ;;  %v403_v41 = vsel %vm305_vm2, %v399_v37, -inf }
 0x221   :  { %404 = vmax.xlane.f32.xlu0 %v403_v41  ;;  %v1512_v42 = vpop.f32.mrb[11].mxu0 }
 0x2ae   :  { %v405_v43 = vpop.xlane.xlu0 %404 }
 0x2af   :  { %v407_v44 = vsub.f32 %v399_v37, %v405_v43 }
 0x2b1   :  { %v410_v45 = vmul.f32 1.442695, %v407_v44 }
 0x2b3   :  { %1655 = vpow2.f32 %v410_v45 }
 0x2bd   :  { %v1656_v48 = vpop.eup %1655 }
 0x2be   :  { %v415_v49 = vsel %vm305_vm2, %v1656_v48, 0.0 }
 0x2bf   :  { %416 = vadd.xlane.f32.xlu0 %v415_v49 }
 0x2c3   :  { %401 = vmax.xlane.f32.xlu0 %v400_v51 }
 0x2d9   :  { %522 = vrot.lane.b32.xlu0 %v2019_v8, %s1849_s3 }
 0x2dd   :  { %519 = vrot.lane.b32.xlu0 %v2032_v20, %s1849_s3 }
 0x34c   :  { %v417_v52 = vpop.xlane.xlu0 %416 }
 0x34d   :  { %1657 = vrcp.f32 %v417_v52 }
 0x350   :  { %v402_v53 = vpop.xlane.xlu0 %401 }
 0x351   :  { %v406_v54 = vsub.f32 %v398_v50, %v402_v53 }
 0x353   :  { %v408_v55 = vmul.f32 1.442695, %v406_v54 }
 0x354   :  { %v523_v6 = vpop.permute.xlu0 %522 }
 0x355   :  { %1659 = vpow2.f32 %v408_v55  ;;  %v528_v9 = vsel %vm305_vm2, %v523_v6, 0 }
 0x357   :  { %v1658_v56 = vpop.eup %1657 }
 0x358   :  { %v421_v57 = vmul.f32 %v1658_v56, %v1656_v48  ;;  %v520_v10 = vpop.permute.xlu0 %519 }
 0x35a   :  { %v423_v59 = vpack.c.bf16 %v421_v57, %v421_v57 }
 0x35c   :  { %1522 = vmatmul.mubr.msk.bf16.vlgmr.msra.gmra.mrb[12].mxu0 %vm305_vm2, %v423_v59 }
 0x35d   :  { %1532 = vmatpush3.bf16.xpose.msra.mxu0 %v580_v60  ;;  %1533 = vmatprep.mubr.msk.bf16.mxu0 %vm1848_vm0, %v1847_v0 }
 0x35e   :  { %1543 = vmatprep.subr.bf16.mxu0 %v1847_v0 }
 0x35f   :  { %v1660_v61 = vpop.eup %1659 }
 0x360   :  { %v412_v62 = vsel %vm305_vm2, %v1660_v61, 0.0 }
 0x361   :  { %413 = vadd.xlane.f32.xlu1 %v412_v62 }
 0x364   :  { %1534 = vmatmul.mubr.msk.bf16.vlgmr.msra.gmra.mrb[16].mxu0 %vm305_vm2, %v572_v63 }
 0x365   :  { %1545 = vmatprep.mubr.msk.bf16.mxu0 %vm1848_vm0, %v1847_v0 }
 0x372   :  { %698 = vrot.lane.b32.xlu1 %v2047_v25, %s1849_s3 }
 0x3ee   :  { %v414_v1 = vpop.xlane.xlu1 %413 }
 0x3ef   :  { %1661 = vrcp.f32 %v414_v1 }
 0x3f2   :  { %v699_v2 = vpop.permute.xlu1 %698 }
 0x3f3   :  { %v704_v3 = vsel %vm427_vm3, %v699_v2, 0 }
 0x3f4   :  { %1544 = vmatpush3.bf16.msra.mxu0 %v704_v3 }
 0x3f5   :  { %1561 = vmatprep.subr.bf16.mxu0 %v1847_v0 }
 0x3f9   :  { %v1662_v4 = vpop.eup %1661 }
 0x3fa   :  { %v420_v5 = vmul.f32 %v1662_v4, %v1660_v61 }
 0x3fc   :  { %v422_v7 = vpack.c.bf16 %v420_v5, %v420_v5 }
 0x3fe   :  { %1516 = vmatmul.mubr.msk.bf16.vlgmr.msra.gmra.mrb[8].mxu1 %vm305_vm2, %v422_v7 }
 0x3ff   :  { %1526 = vmatpush3.bf16.xpose.msra.mxu1 %v528_v9  ;;  %1527 = vmatprep.mubr.msk.bf16.mxu1 %vm1848_vm0, %v1847_v0 }
 0x400   :  { %1537 = vmatprep.subr.bf16.mxu1 %v1847_v0 }
 0x406   :  { %1528 = vmatmul.mubr.msk.bf16.vlgmr.msra.gmra.mrb[12].mxu1 %vm305_vm2, %v520_v10 }
 0x407   :  { %1539 = vmatprep.mubr.msk.bf16.mxu1 %vm1848_vm0, %v1847_v0 }
 0x42f   :  { %v2095_v11 = vpop.f32.mrb[12].mxu0 }
 0x430   :  { %v1523_v13 = vpop.f32.mrb[13].mxu0 }
 0x431   :  { %v514_v14 = vpop.f32.mrb[14].mxu0 }
 0x432   :  { %v1524_v15 = vpop.f32.mrb[15].mxu0 }
 0x437   :  { %v616_v16 = vpop.f32.mrb[16].mxu0 }
 0x438   :  { %v623_v17 = vsel %vm2055_vm4, %v616_v16, -1000000.0  ;;  %v1535_v19 = vpop.f32.mrb[17].mxu0 }
 0x439   :  { %v619_v21 = vpop.f32.mrb[18].mxu0  ;;  %v627_v23 = vsel %vm305_vm2, %v623_v17, -inf }
 0x43a   :  { %628 = vmax.xlane.f32.xlu0 %v627_v23  ;;  %v1536_v24 = vpop.f32.mrb[19].mxu0 }
 0x43b   :  { %v296_v24 = vld [vmem:[%s2247_s7 + $0x4] sm:$0xf] }
 0x450   :  { %841 = vrot.lane.b32.xlu0 %v2032_v20, %s1850_s18 }
 0x4c7   :  { %v629_v26 = vpop.xlane.xlu0 %628 }
 0x4c8   :  { %v631_v27 = vsub.f32 %v623_v17, %v629_v26  ;;  %v751_v26 = vsel %vm427_vm3, %v296_v24, 0 }
 0x4ca   :  { %v634_v28 = vmul.f32 1.442695, %v631_v27 }
 0x4cb   :  { %v842_v51 = vpop.permute.xlu0 %841 }
 0x4cc   :  { %1663 = vpow2.f32 %v634_v28 }
 0x4d1   :  { %v2102_v29 = vpop.f32.mrb[8].mxu1 }
 0x4d2   :  { %v517_v30 = vpack.c.bf16 %v2095_v11, %v2102_v29  ;;  %v1517_v31 = vpop.f32.mrb[9].mxu1 }
 0x4d3   :  { %v468_v32 = vpop.f32.mrb[10].mxu1 }
 0x4d4   :  { %v1518_v34 = vpop.f32.mrb[11].mxu1 }
 0x4d6   :  { %v1664_v35 = vpop.eup %1663 }
 0x4d7   :  { %v639_v36 = vsel %vm305_vm2, %v1664_v35, 0.0 }
 0x4d8   :  { %640 = vadd.xlane.f32.xlu1 %v639_v36 }
 0x4d9   :  { %v564_v37 = vpop.f32.mrb[12].mxu1 }
 0x4da   :  { %v1529_v38 = vpop.f32.mrb[13].mxu1  ;;  %v622_v41 = vsel %vm2062_vm5, %v564_v37, -1000000.0 }
 0x4db   :  { %v567_v39 = vpop.f32.mrb[14].mxu1  ;;  %v624_v42 = vsel %vm305_vm2, %v622_v41, -inf }
 0x4dc   :  { %v1530_v40 = vpop.f32.mrb[15].mxu1 }
 0x4dd   :  { %v295_v40 = vld [vmem:[%s2247_s7] sm:$0xf] }
 0x4e9   :  { %843 = vrot.lane.b32.xlu1 %v2019_v8, %s1850_s18 }
 0x4ed   :  { %893 = vrot.lane.b32.xlu1 %v2021_v12, %s1850_s18 }
 0x4f1   :  { %891 = vrot.lane.b32.xlu1 %v2029_v18, %s1850_s18 }
 0x515   :  { %625 = vmax.xlane.f32.xlu1 %v624_v42 }
 0x526   :  { %649 = vrot.lane.b32.xlu1 %v2045_v22, %s1849_s3 }
 0x565   :  { %v641_v43 = vpop.xlane.xlu1 %640 }
 0x566   :  { %1665 = vrcp.f32 %v641_v43 }
 0x569   :  { %v844_v46 = vpop.permute.xlu1 %843 }
 0x56a   :  { %v849_v49 = vsel %vm305_vm2, %v844_v46, 0 }
 0x56d   :  { %v894_v50 = vpop.permute.xlu1 %893 }
 0x56e   :  { %v899_v52 = vsel %vm305_vm2, %v894_v50, 0 }
 0x570   :  { %v1666_v44 = vpop.eup %1665 }
 0x571   :  { %v645_v45 = vmul.f32 %v1666_v44, %v1664_v35  ;;  %v892_v53 = vpop.permute.xlu1 %891 }
 0x573   :  { %v647_v48 = vpack.c.bf16 %v645_v45, %v645_v45 }
 0x575   :  { %1546 = vmatmul.mubr.msk.bf16.vlgmr.msra.gmra.mrb[20].mxu0 %vm305_vm2, %v647_v48 }
 0x576   :  { %1562 = vmatpush3.bf16.xpose.msra.mxu0 %v849_v49  ;;  %1563 = vmatprep.mubr.msk.bf16.mxu0 %vm1848_vm0, %v1847_v0 }
 0x577   :  { %1567 = vmatprep.subr.bf16.mxu0 %v1847_v0 }
 0x57d   :  { %1564 = vmatmul.mubr.msk.bf16.vlgmr.msra.gmra.mrb[24].mxu0 %vm305_vm2, %v842_v51 }
 0x57e   :  { %1568 = vmatpush3.bf16.xpose.msra.mxu0 %v899_v52  ;;  %1569 = vmatprep.mubr.msk.bf16.mxu0 %vm1848_vm0, %v1847_v0 }
 0x57f   :  { %1579 = vmatprep.subr.bf16.mxu0 %v1847_v0 }
 0x585   :  { %1570 = vmatmul.mubr.msk.bf16.vlgmr.msra.gmra.mrb[28].mxu0 %vm305_vm2, %v892_v53 }
 0x586   :  { %1581 = vmatprep.mubr.msk.bf16.mxu0 %vm1848_vm0, %v1847_v0 }
 0x5a2   :  { %v626_v54 = vpop.xlane.xlu1 %625 }
 0x5a3   :  { %v630_v55 = vsub.f32 %v622_v41, %v626_v54 }
 0x5a5   :  { %v632_v56 = vmul.f32 1.442695, %v630_v55 }
 0x5a6   :  { %v650_v57 = vpop.permute.xlu1 %649 }
 0x5a7   :  { %1667 = vpow2.f32 %v632_v56  ;;  %v655_v58 = vsel %vm427_vm3, %v650_v57, 0  ;;  %v297_v56 = vld [vmem:[%s2247_s7 + $0x8] sm:$0xf] }
 0x5a8   :  { %1538 = vmatpush3.bf16.msra.mxu1 %v655_v58  ;;  %v1068_v57 = vsel %vm427_vm3, %v297_v56, 0 }
 0x5a9   :  { %1549 = vmatprep.subr.bf16.mxu1 %v1847_v0 }
 0x5b1   :  { %v1668_v59 = vpop.eup %1667 }
 0x5b2   :  { %v636_v60 = vsel %vm305_vm2, %v1668_v59, 0.0 }
 0x5b3   :  { %637 = vadd.xlane.f32.xlu0 %v636_v60 }
 0x640   :  { %v638_v61 = vpop.xlane.xlu0 %637 }
 0x641   :  { %1669 = vrcp.f32 %v638_v61 }
 0x648   :  { %v740_v62 = vpop.f32.mrb[20].mxu0 }
 0x649   :  { %v1547_v63 = vpop.f32.mrb[21].mxu0 }
 0x64a   :  { %v743_v1 = vpop.f32.mrb[22].mxu0 }
 0x64b   :  { %v1670_v2 = vpop.eup %1669  ;;  %v1548_v3 = vpop.f32.mrb[23].mxu0 }
 0x64c   :  { %v644_v4 = vmul.f32 %v1670_v2, %v1668_v59 }
 0x64e   :  { %v646_v5 = vpack.c.bf16 %v644_v4, %v644_v4 }
 0x650   :  { %1540 = vmatmul.mubr.msk.bf16.vlgmr.msra.gmra.mrb[16].mxu1 %vm305_vm2, %v646_v5  ;;  %v885_v6 = vpop.f32.mrb[24].mxu0 }
 0x651   :  { %v941_v7 = vsel %vm2062_vm5, %v885_v6, -1000000.0  ;;  %v1565_v9 = vpop.f32.mrb[25].mxu0  ;;  %1551 = vmatprep.mubr.msk.bf16.mxu1 %vm1848_vm0, %v1847_v0  ;;  %1550 = vmatpush3.bf16.msra.mxu1 %v751_v26 }
 0x652   :  { %v888_v10 = vpop.f32.mrb[26].mxu0  ;;  %v943_v13 = vsel %vm305_vm2, %v941_v7, -inf  ;;  %1555 = vmatprep.subr.bf16.mxu1 %v1847_v0 }
 0x653   :  { %944 = vmax.xlane.f32.xlu0 %v943_v13  ;;  %v1566_v14 = vpop.f32.mrb[27].mxu0 }
 0x658   :  { %v935_v15 = vpop.f32.mrb[28].mxu0 }
 0x659   :  { %v942_v16 = vsel %vm2055_vm4, %v935_v15, -1000000.0  ;;  %v1571_v17 = vpop.f32.mrb[29].mxu0 }
 0x65a   :  { %v938_v19 = vpop.f32.mrb[30].mxu0  ;;  %v946_v21 = vsel %vm305_vm2, %v942_v16, -inf }
 0x65b   :  { %947 = vmax.xlane.f32.xlu0 %v946_v21  ;;  %v1572_v23 = vpop.f32.mrb[31].mxu0 }
 0x6e0   :  { %v945_v27 = vpop.xlane.xlu0 %944 }
 0x6e1   :  { %v949_v28 = vsub.f32 %v941_v7, %v945_v27 }
 0x6e3   :  { %v951_v31 = vmul.f32 1.442695, %v949_v28 }
 0x6e5   :  { %1671 = vpow2.f32 %v951_v31 }
 0x6e8   :  { %v948_v32 = vpop.xlane.xlu0 %947 }
 0x6e9   :  { %v950_v34 = vsub.f32 %v942_v16, %v948_v32 }
 0x6eb   :  { %v953_v35 = vmul.f32 1.442695, %v950_v34 }
 0x6ed   :  { %1673 = vpow2.f32 %v953_v35 }
 0x6ef   :  { %v1672_v36 = vpop.eup %1671 }
 0x6f0   :  { %v955_v37 = vsel %vm305_vm2, %v1672_v36, 0.0 }
 0x6f1   :  { %956 = vadd.xlane.f32.xlu0 %v955_v37 }
 0x6f7   :  { %v1674_v38 = vpop.eup %1673 }
 0x6f8   :  { %v958_v39 = vsel %vm305_vm2, %v1674_v38, 0.0 }
 0x6f9   :  { %959 = vadd.xlane.f32.xlu1 %v958_v39 }
 0x707   :  { %967 = vrot.lane.b32.xlu0 %v2045_v22, %s1850_s18 }
 0x70a   :  { %1113 = vrot.lane.b32.xlu1 %v2032_v20, %s1851_s10  ;;  %v798_v20 = vsel %vm427_vm3, %v295_v40, 0 }
 0x70b   :  { %1015 = vrot.lane.b32.xlu0 %v2047_v25, %s1850_s18 }
 0x70f   :  { %1115 = vrot.lane.b32.xlu0 %v2019_v8, %s1851_s10 }
 0x713   :  { %1165 = vrot.lane.b32.xlu0 %v2021_v12, %s1851_s10 }
 0x717   :  { %1163 = vrot.lane.b32.xlu0 %v2029_v18, %s1851_s10 }
 0x723   :  { %v691_v41 = vpop.f32.mrb[16].mxu1 }
 0x724   :  { %v746_v42 = vpack.c.bf16 %v740_v62, %v691_v41  ;;  %v1541_v43 = vpop.f32.mrb[17].mxu1 }
 0x725   :  { %v694_v44 = vpop.f32.mrb[18].mxu1 }
 0x726   :  { %v1542_v45 = vpop.f32.mrb[19].mxu1  ;;  %1552 = vmatmul.mubr.msk.bf16.vlgmr.msra.gmra.mrb[20].mxu1 %vm305_vm2, %v746_v42 }
 0x727   :  { %1556 = vmatpush3.bf16.msra.mxu1 %v798_v20  ;;  %1557 = vmatprep.mubr.msk.bf16.mxu1 %vm1848_vm0, %v1847_v0 }
 0x728   :  { %1573 = vmatprep.subr.bf16.mxu1 %v1847_v0 }
 0x732   :  { %1558 = vmatmul.mubr.msk.bf16.vlgmr.msra.gmra.mrb[20].mxu1 %vm305_vm2, %v517_v30 }
 0x733   :  { %1575 = vmatprep.mubr.msk.bf16.mxu1 %vm1848_vm0, %v1847_v0 }
 0x77e   :  { %v957_v8 = vpop.xlane.xlu0 %956 }
 0x77f   :  { %1675 = vrcp.f32 %v957_v8 }
 0x782   :  { %v968_v12 = vpop.permute.xlu0 %967 }
 0x783   :  { %v973_v18 = vsel %vm427_vm3, %v968_v12, 0 }
 0x784   :  { %1574 = vmatpush3.bf16.msra.mxu1 %v973_v18 }
 0x785   :  { %1585 = vmatprep.subr.bf16.mxu1 %v1847_v0 }
 0x786   :  { %v960_v46 = vpop.xlane.xlu1 %959  ;;  %v1016_v48 = vpop.permute.xlu0 %1015 }
 0x787   :  { %1677 = vrcp.f32 %v960_v46  ;;  %v1021_v49 = vsel %vm427_vm3, %v1016_v48, 0 }
 0x788   :  { %1580 = vmatpush3.bf16.msra.mxu0 %v1021_v49 }
 0x789   :  { %v1676_v11 = vpop.eup %1675  ;;  %1591 = vmatprep.subr.bf16.mxu0 %v1847_v0 }
 0x78a   :  { %v963_v29 = vmul.f32 %v1676_v11, %v1672_v36  ;;  %v1116_v52 = vpop.permute.xlu0 %1115  ;;  %v1114_v55 = vpop.permute.xlu1 %1113 }
 0x78b   :  { %v1121_v54 = vsel %vm305_vm2, %v1116_v52, 0 }
 0x78c   :  { %v965_v30 = vpack.c.bf16 %v963_v29, %v963_v29 }
 0x78e   :  { %1576 = vmatmul.mubr.msk.bf16.vlgmr.msra.gmra.mrb[24].mxu1 %vm305_vm2, %v965_v30  ;;  %v1166_v62 = vpop.permute.xlu0 %1165 }
 0x78f   :  { %1587 = vmatprep.mubr.msk.bf16.mxu1 %vm1848_vm0, %v1847_v0  ;;  %1586 = vmatpush3.bf16.msra.mxu1 %v1068_v57  ;;  %v1171_v4 = vsel %vm305_vm2, %v1166_v62, 0 }
 0x790   :  { %1597 = vmatprep.subr.bf16.mxu1 %v1847_v0 }
 0x791   :  { %v1678_v50 = vpop.eup %1677 }
 0x792   :  { %v964_v51 = vmul.f32 %v1678_v50, %v1674_v38  ;;  %v1164_v10 = vpop.permute.xlu0 %1163 }
 0x794   :  { %v966_v53 = vpack.c.bf16 %v964_v51, %v964_v51 }
 0x796   :  { %1582 = vmatmul.mubr.msk.bf16.vlgmr.msra.gmra.mrb[32].mxu0 %vm305_vm2, %v966_v53 }
 0x797   :  { %1592 = vmatpush3.bf16.xpose.msra.mxu0 %v1121_v54  ;;  %1593 = vmatprep.mubr.msk.bf16.mxu0 %vm1848_vm0, %v1847_v0 }
 0x798   :  { %1603 = vmatprep.subr.bf16.mxu0 %v1847_v0 }
 0x79e   :  { %1594 = vmatmul.mubr.msk.bf16.vlgmr.msra.gmra.mrb[36].mxu0 %vm305_vm2, %v1114_v55 }
 0x79f   :  { %1605 = vmatprep.mubr.msk.bf16.mxu0 %vm1848_vm0, %v1847_v0 }
 0x861   :  { %v1009_v58 = vpop.f32.mrb[24].mxu1 }
 0x862   :  { %v1577_v59 = vpop.f32.mrb[25].mxu1 }
 0x863   :  { %v1012_v60 = vpop.f32.mrb[26].mxu1 }
 0x864   :  { %v1578_v61 = vpop.f32.mrb[27].mxu1 }
 0x869   :  { %v1057_v63 = vpop.f32.mrb[32].mxu0 }
 0x86a   :  { %v1063_v1 = vpack.c.bf16 %v1057_v63, %v1009_v58  ;;  %v1583_v2 = vpop.f32.mrb[33].mxu0 }
 0x86b   :  { %v1060_v3 = vpop.f32.mrb[34].mxu0 }
 0x86c   :  { %v1584_v5 = vpop.f32.mrb[35].mxu0  ;;  %1588 = vmatmul.mubr.msk.bf16.vlgmr.msra.gmra.mrb[20].mxu1 %vm305_vm2, %v1063_v1 }
 0x86d   :  { %1598 = vmatpush3.bf16.xpose.msra.mxu1 %v1171_v4  ;;  %1599 = vmatprep.mubr.msk.bf16.mxu1 %vm1848_vm0, %v1847_v0 }
 0x86e   :  { %1609 = vmatprep.subr.bf16.mxu1 %v1847_v0 }
 0x871   :  { %v1157_v6 = vpop.f32.mrb[36].mxu0 }
 0x872   :  { %v1213_v7 = vsel %vm2062_vm5, %v1157_v6, -1000000.0  ;;  %v1595_v9 = vpop.f32.mrb[37].mxu0 }
 0x873   :  { %v1160_v13 = vpop.f32.mrb[38].mxu0  ;;  %v1215_v14 = vsel %vm305_vm2, %v1213_v7, -inf }
 0x874   :  { %1600 = vmatmul.mubr.msk.bf16.vlgmr.msra.gmra.mrb[28].mxu1 %vm305_vm2, %v1164_v10  ;;  %1216 = vmax.xlane.f32.xlu0 %v1215_v14  ;;  %v1596_v15 = vpop.f32.mrb[39].mxu0 }
 0x875   :  { %1611 = vmatprep.mubr.msk.bf16.mxu1 %vm1848_vm0, %v1847_v0 }
 0x901   :  { %v1217_v16 = vpop.xlane.xlu0 %1216 }
 0x902   :  { %v1221_v17 = vsub.f32 %v1213_v7, %v1217_v16 }
 0x904   :  { %v1223_v19 = vmul.f32 1.442695, %v1221_v17 }
 0x906   :  { %1679 = vpow2.f32 %v1223_v19 }
 0x910   :  { %v1680_v21 = vpop.eup %1679 }
 0x911   :  { %v1227_v47 = vsel %vm305_vm2, %v1680_v21, 0.0 }
 0x912   :  { %1228 = vadd.xlane.f32.xlu0 %v1227_v47 }
 0x947   :  { %v1207_v23 = vpop.f32.mrb[28].mxu1 }
 0x948   :  { %v1214_v24 = vsel %vm2055_vm4, %v1207_v23, -1000000.0  ;;  %v1601_v26 = vpop.f32.mrb[29].mxu1 }
 0x949   :  { %v1210_v27 = vpop.f32.mrb[30].mxu1  ;;  %v1218_v28 = vsel %vm305_vm2, %v1214_v24, -inf }
 0x94a   :  { %1219 = vmax.xlane.f32.xlu1 %v1218_v28  ;;  %v1602_v31 = vpop.f32.mrb[31].mxu1 }
 0x95b   :  { %1287 = vrot.lane.b32.xlu1 %v2047_v25, %s1851_s10 }
 0x99f   :  { %v1229_v39 = vpop.xlane.xlu0 %1228 }
 0x9d7   :  { %v1220_v32 = vpop.xlane.xlu1 %1219 }
 0x9d8   :  { %v1222_v34 = vsub.f32 %v1214_v24, %v1220_v32 }
 0x9da   :  { %v1225_v35 = vmul.f32 1.442695, %v1222_v34 }
 0x9db   :  { %v1288_v36 = vpop.permute.xlu1 %1287 }
 0x9dc   :  { %1681 = vpow2.f32 %v1225_v35  ;;  %v1293_v37 = vsel %vm427_vm3, %v1288_v36, 0 }
 0x9dd   :  { %1610 = vmatpush3.bf16.msra.mxu1 %v1293_v37  ;;  %1683 = vrcp.f32 %v1229_v39 }
 0x9de   :  { %1615 = vmatprep.subr.bf16.mxu1 %v1847_v0 }
 0x9e6   :  { %v1682_v33 = vpop.eup %1681 }
 0x9e7   :  { %v1230_v38 = vsel %vm305_vm2, %v1682_v33, 0.0  ;;  %v1684_v25 = vpop.eup %1683 }
 0x9e8   :  { %1231 = vadd.xlane.f32.xlu0 %v1230_v38  ;;  %v1235_v41 = vmul.f32 %v1684_v25, %v1680_v21 }
 0x9ea   :  { %v1237_v20 = vpack.c.bf16 %v1235_v41, %v1235_v41 }
 0x9fe   :  { %1239 = vrot.lane.b32.xlu0 %v2045_v22, %s1851_s10  ;;  %v298_v22 = vld [vmem:[%s2247_s7 + $0xc] sm:$0xf]  ;;  %s1807_s7 = scalar_lea.vmem %s1394_s16, 256 }
 0x9ff   :  { %v1340_v12 = vsel %vm427_vm3, %v298_v22, 0  ;;  %p1808_p1 = scmp.ne.s32.totalorder %s1394_s16, %s1807_s7  ;;  %p1813_p3 = scmp.lt.s32.totalorder %s1807_s7, %s1807_s7 }
 0xa01   :  { %p1814_p4 = por %p1813_p3, %p1812_p2 }
 0xa03   :  { %p1815_p5 = pnand %p1814_p4, %p1808_p1 }
 0xa75   :  { %v1232_v40 = vpop.xlane.xlu0 %1231 }
 0xa76   :  { %1685 = vrcp.f32 %v1232_v40 }
 0xa79   :  { %v1240_v42 = vpop.permute.xlu0 %1239 }
 0xa7a   :  { %v1245_v43 = vsel %vm427_vm3, %v1240_v42, 0 }
 0xa7b   :  { %1604 = vmatpush3.bf16.msra.mxu0 %v1245_v43 }
 0xa7e   :  { %1606 = vmatmul.mubr.msk.bf16.vlgmr.msra.gmra.mrb[40].mxu0 %vm305_vm2, %v1237_v20 }
 0xa80   :  { %v1686_v44 = vpop.eup %1685 }
 0xa81   :  { %v1236_v45 = vmul.f32 %v1686_v44, %v1682_v33 }
 0xa83   :  { %v1238_v8 = vpack.c.bf16 %v1236_v45, %v1236_v45 }
 0xa85   :  { %1612 = vmatmul.mubr.msk.bf16.vlgmr.msra.gmra.mrb[32].mxu1 %vm305_vm2, %v1238_v8 }
 0xa86   :  { %1617 = vmatprep.mubr.msk.bf16.mxu1 %vm1848_vm0, %v1847_v0  ;;  %1616 = vmatpush3.bf16.msra.mxu1 %v1340_v12 }
 0xb51   :  { %v1281_v18 = vpop.f32.mrb[40].mxu0 }
 0xb52   :  { %v1607_v46 = vpop.f32.mrb[41].mxu0 }
 0xb53   :  { %v1284_v48 = vpop.f32.mrb[42].mxu0 }
 0xb54   :  { %v1608_v49 = vpop.f32.mrb[43].mxu0 }
 0xb58   :  { %v1329_v11 = vpop.f32.mrb[32].mxu1 }
 0xb59   :  { %v1335_v29 = vpack.c.bf16 %v1329_v11, %v1281_v18  ;;  %v1613_v30 = vpop.f32.mrb[33].mxu1 }
 0xb5a   :  { %v1332_v50 = vpop.f32.mrb[34].mxu1 }
 0xb5b   :  { %v1614_v51 = vpop.f32.mrb[35].mxu1  ;;  %1618 = vmatmul.mubr.msk.bf16.vlgmr.msra.gmra.mrb[20].mxu1 %vm305_vm2, %v1335_v29 }
 0xc2e   :  { %v1376_v0 = vpop.f32.mrb[20].mxu1 }
 0xc2f   :  { %1386 = vst.msk [vmem:[#allocation13] sm:$0xff] %vm1385_vm6, %v1376_v0  ;;  %v1619_v52 = vpop.f32.mrb[21].mxu1 }
 0xc30   :  { %v1379_v53 = vpop.f32.mrb[22].mxu1 }
 0xc31   :  { %1387 = vst.msk [vmem:[#allocation13 + $0x8] sm:$0xff] %vm1385_vm6, %v1379_v53  ;;  %v1620_v54 = vpop.f32.mrb[23].mxu1 }
 0xc32   :  { %1818 = shalt.err (!%p1815_p5)
}
 0xc33   :  { %s1819_s20 = scalar_lea.hbm %s2248_s8, 256 }
 0xc34   :  { %p1820_p6 = scmp.ne.s32.totalorder %s2248_s8, %s1819_s20  ;;  %p1823_p7 = scmp.lt.u32.totalorder %s1819_s20, %s2248_s8 }
 0xc36   :  { %p1825_p8 = pnand %p1823_p7, %p1820_p6 }
 0xc38   :  { %1828 = shalt.err (!%p1825_p8)
}
 0xc39   :  { %s1853_s25 = smov 128   ;;  %s1854_s28 = smov 8  }
 0xc3a   :  { %1399 = dma.vmem_to_hbm [thread:$0]  %s1394_s16, 256, %s2248_s8, [#allocation6], %s1853_s25, %s1853_s25, %s1854_s28  }
 0xc3b   :  { %1837 = dma.done.wait [#allocation6], 256  }
 0xc3c   :  { %1838 = vsyncadd [#allocation6], 4294967040 }
 0xc3d   :  { %1403 = vsyncpa [#allocation5], 1 }
 0xc3e   :  { %1404 = vsyncpa [#allocation8], 1 }
 0xc3f   :  { %1405 = vsyncpa [#allocation11], 1 }
 0xc40   :  { %1406 = vsyncpa [#allocation6], 1 }

</bundles_post_ra>
